<compile_context>
chip_gen: v7x
topology: tpu7x:2x2x1
jax: 0.10.0
libtpu: 0.0.40
codegen_flags: <defaults>
</compile_context>

<pallas_src>
import functools

import numpy as np

import jax
import jax.numpy as jnp
from jax.experimental import pallas as pl
from jax.experimental.pallas import tpu as pltpu

IN_FEATURES = 116   # fixed by the module: GCNConv(116, hidden_channels)
HIDDEN = 32
NUM_CLASSES = 2

SUBLANE = 8
H_PAD = 128         # 32  -> 128 lanes (hidden)
C_PAD = 128         # 2   -> 128 lanes (logits)


def _round_up(v, m):
    return (v + m - 1) // m * m


def _vmem_capacity_bytes():
    try:
        return int(pltpu.get_tpu_info().vmem_capacity_bytes)
    except Exception:
        return 64 * 1024 * 1024          # conservative: v7x per-TensorCore


def gcn_kernel(nz_ref, cnt_ref, a_ref, dinv_ref, xw_ref, p_ref, invc_ref,
               b1_ref, wl_ref, bl_ref, out_t_ref, out_x_ref, m_acc, pool_acc):
    """Fused GCNConv -> ReLU -> global_mean_pool -> Linear over nonzero A tiles.

    nz_ref:   [n_rb*kmax] SMEM  col-block index per (row-block, k)  (prefetch)
    cnt_ref:  [n_rb]      SMEM  nonzero col-block count per row block (prefetch)
    a_ref:    [tm, tm]    int8  A(+I) tile (streamed, only nonzero tiles DMA'd)
    dinv_ref: [tm, 1]     f32   D^-1/2 for this row block
    xw_ref:   [tm, 128]   bf16  (D^-1/2 * X @ W1) rows for the current col block
    p_ref:    [Bp, tm]    bf16  unnormalized one-hot pooling columns
    invc_ref: [Bp, 1]     f32   1 / nodes-per-graph
    b1/wl/bl: resident GCNConv bias, Linear weight/bias (zero-padded)
    out_t_ref:[Bp, 128]   logits slab (lanes 0..1 valid)
    out_x_ref:[Bp, 128]   pooled embedding slab (lanes 0..31 valid)
    m_acc:    [tm, 128]   f32   per-row-block contraction accumulator
    pool_acc: [Bp, 128]   f32   pooled accumulator (whole grid)
    """
    i = pl.program_id(0)
    k = pl.program_id(1)
    last_i = pl.num_programs(0) - 1
    last_k = pl.num_programs(1) - 1

    @pl.when(jnp.logical_and(i == 0, k == 0))
    def _():
        pool_acc[...] = jnp.zeros_like(pool_acc)

    @pl.when(k == 0)
    def _():
        m_acc[...] = jnp.zeros_like(m_acc)

    # Skip the matmul for padded / duplicate (clamped) block indices.
    @pl.when(k < cnt_ref[i])
    def _():
        a_bf = a_ref[...].astype(jnp.bfloat16)     # int8 -> bf16 (VPU slack)
        m_acc[...] += jnp.dot(a_bf, xw_ref[...],
                              preferred_element_type=jnp.float32)

    @pl.when(k == last_k)
    def _():
        # D^-1/2 row scaling (once per row block) + bias + ReLU, then pool.
        h = jnp.maximum(m_acc[...] * dinv_ref[...] + b1_ref[...], 0.0)
        pool_acc[...] += jnp.dot(p_ref[...], h.astype(jnp.bfloat16),
                                 preferred_element_type=jnp.float32)

    @pl.when(jnp.logical_and(i == last_i, k == last_k))
    def _():
        pooled = pool_acc[...] * invc_ref[...]     # mean = sum / count (f32)
        # Dropout(0.5) in eval mode is the identity.
        # TODO(synk): training-mode dropout (pltpu.prng_random_bits mask) not emitted.
        out_x_ref[...] = pooled
        out_t_ref[...] = (jnp.dot(pooled, wl_ref[...],
                                  preferred_element_type=jnp.float32)
                          + bl_ref[...])


@functools.partial(
    jax.jit,
    static_argnames=("num_graphs", "n_pad", "b_pad", "tm", "kmax", "vmem_limit"))
def _gcn_forward_impl(x, edge_index, batch, params, nzmap, cnt, *,
                      num_graphs, n_pad, b_pad, tm, kmax, vmem_limit):
    n = x.shape[0]
    src, dst = edge_index[0], edge_index[1]
    idx = jnp.arange(n)

    # A(+I) built once, directly in the padded shape; stored int8 (entries are
    # small non-negative edge multiplicities; must stay <= 127).
    # NOTE: like the reference, self loops are always added; assumes edge_index
    # contains none (PyG's add_remaining_self_loops would not double count).
    adj = jnp.zeros((n_pad, n_pad), jnp.int32)
    adj = adj.at[dst, src].add(1)
    adj = adj.at[idx, idx].add(1)
    adj_i8 = adj.astype(jnp.int8)

    # Degrees straight from the edge list (no dense N^2 reduction).
    deg = jnp.zeros((n,), jnp.float32).at[dst].add(1.0) + 1.0
    dinv = jax.lax.rsqrt(deg)
    dinv_p = jnp.zeros((n_pad, 1), jnp.float32).at[:n, 0].set(dinv)

    w1, b1, wl, bl = params
    # X @ W1 hoisted out of the kernel, D^-1/2 column scaling folded in, bf16.
    xw = dinv[:, None] * (x @ w1)
    xw_p = jnp.zeros((n_pad, H_PAD), jnp.bfloat16)
    xw_p = xw_p.at[:n, :HIDDEN].set(xw.astype(jnp.bfloat16))

    # Unnormalized one-hot pooling matrix ({0,1} exact in bf16); normalization
    # happens at the kernel finalize via inv-counts.
    onehot = batch[None, :] == jnp.arange(num_graphs)[:, None]
    pool_p = jnp.zeros((b_pad, n_pad), jnp.bfloat16)
    pool_p = pool_p.at[:num_graphs, :n].set(onehot.astype(jnp.bfloat16))
    counts = jnp.maximum(jnp.sum(onehot, axis=1).astype(jnp.float32), 1.0)
    invc_p = jnp.zeros((b_pad, 1), jnp.float32).at[:num_graphs, 0].set(1.0 / counts)

    b1_p = jnp.zeros((1, H_PAD), jnp.float32).at[0, :HIDDEN].set(b1)
    wl_p = jnp.zeros((H_PAD, C_PAD), jnp.float32).at[:HIDDEN, :NUM_CLASSES].set(wl)
    bl_p = jnp.zeros((1, C_PAD), jnp.float32).at[0, :NUM_CLASSES].set(bl)

    n_rb = n_pad // tm

    grid_spec = pltpu.PrefetchScalarGridSpec(
        num_scalar_prefetch=2,                     # nzmap, cnt -> SMEM
        grid=(n_rb, kmax),
        in_specs=[
            # A tile: data-dependent col block via the prefetched nonzero map.
            pl.BlockSpec((tm, tm), lambda i, k, nz, _c: (i, nz[i * kmax + k])),
            pl.BlockSpec((tm, 1), lambda i, k, nz, _c: (i, 0)),          # dinv rows
            pl.BlockSpec((tm, H_PAD), lambda i, k, nz, _c: (nz[i * kmax + k], 0)),
            pl.BlockSpec((b_pad, tm), lambda i, k, nz, _c: (0, i)),      # pool cols
            pl.BlockSpec((b_pad, 1), lambda i, k, nz, _c: (0, 0)),       # 1/counts
            pl.BlockSpec((1, H_PAD), lambda i, k, nz, _c: (0, 0)),       # b1
            pl.BlockSpec((H_PAD, C_PAD), lambda i, k, nz, _c: (0, 0)),   # W_lin
            pl.BlockSpec((1, C_PAD), lambda i, k, nz, _c: (0, 0)),       # b_lin
        ],
        out_specs=(
            pl.BlockSpec((b_pad, C_PAD), lambda i, k, nz, _c: (0, 0)),   # logits
            pl.BlockSpec((b_pad, H_PAD), lambda i, k, nz, _c: (0, 0)),   # pooled
        ),
        scratch_shapes=[
            pltpu.VMEM((tm, H_PAD), jnp.float32),      # per-row-block accumulator
            pltpu.VMEM((b_pad, H_PAD), jnp.float32),   # pooled accumulator
        ],
    )

    out_t, out_x = pl.pallas_call(
        gcn_kernel,
        out_shape=(
            jax.ShapeDtypeStruct((b_pad, C_PAD), jnp.float32),
            jax.ShapeDtypeStruct((b_pad, H_PAD), jnp.float32),
        ),
        grid_spec=grid_spec,
        compiler_params=pltpu.CompilerParams(
            # Both axes carry accumulators -> arbitrary (sequential).
            dimension_semantics=("arbitrary", "arbitrary"),
            vmem_limit_bytes=vmem_limit,
        ),
    )(nzmap, cnt, adj_i8, dinv_p, xw_p, pool_p, invc_p, b1_p, wl_p, bl_p)

    return out_t[:num_graphs, :NUM_CLASSES], out_x[:num_graphs, :HIDDEN]


def gcn_forward(x, edge_index, batch, params, *, num_graphs, tile_m=None):
    """Host-side planning (tile size, block-sparsity map) + jitted impl."""
    n = int(x.shape[0])

    if tile_m is None:
        # Generation-aware tile: 512 on 128-MiB-VMEM parts (v5e/v6e), 256 on v7x.
        tm_target = 512 if _vmem_capacity_bytes() >= 96 * 1024 * 1024 else 256
    else:
        assert tile_m % 128 == 0, "tile_m must be a multiple of 128"
        tm_target = tile_m
    tm = max(min(tm_target, _round_up(n, 128)), 128)
    n_pad = _round_up(n, tm)
    b_pad = _round_up(num_graphs, SUBLANE)
    n_rb = n_pad // tm

    # ---- nonzero-(tm,tm)-block map of A(+I), computed from the edge list ----
    ei = np.asarray(edge_index)
    src, dst = ei[0], ei[1]
    occ = np.zeros((n_rb, n_rb), dtype=bool)
    occ[dst // tm, src // tm] = True
    idx = np.arange(n)
    occ[idx // tm, idx // tm] = True                 # self loops
    cnt = occ.sum(axis=1).astype(np.int32)
    kmax = int(max(int(cnt.max()), 1))
    nzmap = np.zeros((n_rb, kmax), dtype=np.int32)
    for r in range(n_rb):
        cols = np.flatnonzero(occ[r])
        if cols.size == 0:
            cols = np.zeros((1,), dtype=np.int64)
        nzmap[r, :cols.size] = cols
        nzmap[r, cols.size:] = cols[-1]              # clamp -> repeated index => DMA skipped
    nzmap = np.ascontiguousarray(nzmap.reshape(-1))  # 1-D -> cheap SMEM layout

    # vmem limit from actual buffer sizes (double-buffered inputs + scratch + outputs),
    # with margin, capped well below v7x's 64 MiB per-TC physical VMEM.
    need = (
        2 * tm * tm * 1                       # A block (int8)
        + 2 * tm * H_PAD * 2                  # XW block (bf16)
        + 2 * tm * 128 * 4                    # dinv rows (lane-padded f32)
        + 2 * b_pad * tm * 2                  # pool cols (bf16)
        + 2 * b_pad * 128 * 4                 # inv counts
        + 2 * H_PAD * C_PAD * 4               # linear weight
        + 4 * SUBLANE * 128 * 4               # biases
        + 2 * b_pad * (C_PAD + H_PAD) * 4     # output slabs
        + (tm + b_pad) * H_PAD * 4            # scratch accumulators
    )
    vmem_limit = int(min(max(4 * need, 32 * 1024 * 1024), 48 * 1024 * 1024))

    return _gcn_forward_impl(
        x, edge_index, batch, params, jnp.asarray(nzmap), jnp.asarray(cnt),
        num_graphs=num_graphs, n_pad=n_pad, b_pad=b_pad, tm=tm, kmax=kmax,
        vmem_limit=vmem_limit)


def gcn_reference(x, edge_index, batch, params, num_graphs):
    """Pure-JAX f32 reference of the same forward pass (eval-mode dropout)."""
    n = x.shape[0]
    src, dst = edge_index[0], edge_index[1]
    adj = jnp.zeros((n, n), jnp.float32).at[dst, src].add(1.0)
    adj = adj + jnp.eye(n, dtype=jnp.float32)
    deg = jnp.sum(adj, axis=1)
    dinv = jnp.where(deg > 0, jax.lax.rsqrt(deg), 0.0)
    a_hat = dinv[:, None] * adj * dinv[None, :]
    w1, b1, wl, bl = params
    h = jnp.maximum(a_hat @ (x @ w1) + b1[None, :], 0.0)
    one_hot = (batch[None, :] == jnp.arange(num_graphs)[:, None]).astype(jnp.float32)
    pool = one_hot / jnp.maximum(one_hot.sum(axis=1, keepdims=True), 1.0)
    pooled = pool @ h
    return pooled @ wl + bl[None, :], pooled


def init_params(key):
    k1, k2, k3, k4 = jax.random.split(key, 4)
    w1 = jax.random.normal(k1, (IN_FEATURES, HIDDEN), jnp.float32) * 0.05
    b1 = jax.random.normal(k2, (HIDDEN,), jnp.float32) * 0.05
    wl = jax.random.normal(k3, (HIDDEN, NUM_CLASSES), jnp.float32) * 0.05
    bl = jax.random.normal(k4, (NUM_CLASSES,), jnp.float32) * 0.05
    return (w1, b1, wl, bl)


if __name__ == "__main__":
    key = jax.random.PRNGKey(0)
    kx, kp = jax.random.split(key)

    num_graphs = 4
    nodes_per_graph = 48
    n = num_graphs * nodes_per_graph          # 192 nodes -> 2 row blocks at tile_m=128

    # Node features [N, 116].
    x = jax.random.normal(kx, (n, IN_FEATURES), jnp.float32)

    # Edge index [2, E]: a bidirectional ring inside each graph.
    srcs, dsts = [], []
    for g in range(num_graphs):
        base = g * nodes_per_graph
        for i in range(nodes_per_graph):
            a = base + i
            b = base + (i + 1) % nodes_per_graph
            srcs += [a, b]
            dsts += [b, a]
    edge_index = jnp.array([srcs, dsts], dtype=jnp.int32)

    # Batch assignment vector [N].
    batch = jnp.repeat(jnp.arange(num_graphs, dtype=jnp.int32), nodes_per_graph)

    params = init_params(kp)

    # tile_m=128 forces a multi-block grid even at this small test size so the
    # K-accumulation + nonzero-block-map path is exercised.
    out_t, out_x = gcn_forward(x, edge_index, batch, params,
                               num_graphs=num_graphs, tile_m=128)
    jax.block_until_ready((out_t, out_x))

    assert out_t.shape == (num_graphs, NUM_CLASSES)
    assert out_x.shape == (num_graphs, HIDDEN)

    ref_t, ref_x = gcn_reference(x, edge_index, batch, params, num_graphs)
    assert jnp.allclose(out_t, ref_t, atol=3e-2, rtol=3e-2)
    assert jnp.allclose(out_x, ref_x, atol=3e-2, rtol=3e-2)

    print("KERNEL_OK")
</pallas_src>

<mosaic_0001>
module attributes {stable_mosaic.version = 11 : i64} {
  func.func private @main(%arg0: i32) attributes {dimension_semantics = [#tpu.dimension_semantics<core_parallel>], iteration_bounds = array<i64: 2>, tpu.core_type = #tpu.core_type<sc_scalar_subcore>, window_params = []} {
    return
  }
}

module attributes {stable_mosaic.version = 11 : i64} {
  func.func private @main(%arg0: i32) attributes {dimension_semantics = [#tpu.dimension_semantics<core_parallel>], iteration_bounds = array<i64: 2>, tpu.core_type = #tpu.core_type<sc_scalar_subcore>, window_params = []} {
    return
  }
}

module attributes {stable_mosaic.version = 11 : i64} {
  func.func @gcn_kernel(%arg0: i32, %arg1: i32, %arg2: memref<4xi32, #tpu.memory_space<smem>>, %arg3: memref<2xi32, #tpu.memory_space<smem>>, %arg4: memref<128x128xi8, #tpu.memory_space<vmem>>, %arg5: memref<128x1xf32, #tpu.memory_space<vmem>>, %arg6: memref<128x128xbf16, #tpu.memory_space<vmem>>, %arg7: memref<8x128xbf16, #tpu.memory_space<vmem>>, %arg8: memref<8x1xf32, #tpu.memory_space<vmem>>, %arg9: memref<1x128xf32, #tpu.memory_space<vmem>>, %arg10: memref<128x128xf32, #tpu.memory_space<vmem>>, %arg11: memref<1x128xf32, #tpu.memory_space<vmem>>, %arg12: memref<8x128xf32, #tpu.memory_space<vmem>>, %arg13: memref<8x128xf32, #tpu.memory_space<vmem>>, %arg14: memref<128x128xf32, #tpu.memory_space<vmem>>, %arg15: memref<8x128xf32, #tpu.memory_space<vmem>>) attributes {dimension_semantics = [#tpu.dimension_semantics<arbitrary>, #tpu.dimension_semantics<arbitrary>], iteration_bounds = array<i64: 2, 2>, scalar_prefetch = 2 : i64, scratch_operands = 2 : i64, tpu.core_type = #tpu.core_type<tc>, window_params = [{transform_indices = @transform_0, window_bounds = array<i64: 128, 128>}, {transform_indices = @transform_1, window_bounds = array<i64: 128, 1>}, {transform_indices = @transform_2, window_bounds = array<i64: 128, 128>}, {transform_indices = @transform_3, window_bounds = array<i64: 8, 128>}, {pipeline_mode = #tpu.pipeline_mode<synchronous>, transform_indices = @transform_4, window_bounds = array<i64: 8, 1>}, {pipeline_mode = #tpu.pipeline_mode<synchronous>, transform_indices = @transform_5, window_bounds = array<i64: 1, 128>}, {pipeline_mode = #tpu.pipeline_mode<synchronous>, transform_indices = @transform_6, window_bounds = array<i64: 128, 128>}, {pipeline_mode = #tpu.pipeline_mode<synchronous>, transform_indices = @transform_7, window_bounds = array<i64: 1, 128>}, {pipeline_mode = #tpu.pipeline_mode<synchronous>, transform_indices = @transform_8, window_bounds = array<i64: 8, 128>}, {pipeline_mode = #tpu.pipeline_mode<synchronous>, transform_indices = @transform_9, window_bounds = array<i64: 8, 128>}]} {
    %c0_i32 = arith.constant 0 : i32
    %0 = arith.cmpi eq, %arg0, %c0_i32 : i32
    %c0_i32_0 = arith.constant 0 : i32
    %1 = arith.cmpi eq, %arg1, %c0_i32_0 : i32
    %2 = arith.andi %0, %1 : i1
    %3 = arith.extui %2 : i1 to i32
    %c0_i32_1 = arith.constant 0 : i32
    %4 = arith.cmpi ne, %3, %c0_i32_1 : i32
    scf.if %4 {
      %cst = arith.constant 0.000000e+00 : f32
      %21 = vector.broadcast %cst : f32 to vector<8x128xf32>
      %c0 = arith.constant 0 : index
      %c0_9 = arith.constant 0 : index
      %22 = vector.load %arg15[%c0, %c0_9] : memref<8x128xf32, #tpu.memory_space<vmem>>, vector<8x128xf32>
      tpu.vector_store %arg15[%c0, %c0_9], %21 {strides = array<i32>} : memref<8x128xf32, #tpu.memory_space<vmem>>, vector<8x128xf32>,
    } else {
    }
    %c0_i32_2 = arith.constant 0 : i32
    %5 = arith.cmpi eq, %arg1, %c0_i32_2 : i32
    %6 = arith.extui %5 : i1 to i32
    %c0_i32_3 = arith.constant 0 : i32
    %7 = arith.cmpi ne, %6, %c0_i32_3 : i32
    scf.if %7 {
      %cst = arith.constant 0.000000e+00 : f32
      %21 = vector.broadcast %cst : f32 to vector<128x128xf32>
      %c0 = arith.constant 0 : index
      %c0_9 = arith.constant 0 : index
      %22 = vector.load %arg14[%c0, %c0_9] : memref<128x128xf32, #tpu.memory_space<vmem>>, vector<128x128xf32>
      tpu.vector_store %arg14[%c0, %c0_9], %21 {strides = array<i32>} : memref<128x128xf32, #tpu.memory_space<vmem>>, vector<128x128xf32>,
    } else {
    }
    %8 = arith.index_cast %arg0 : i32 to index
    %9 = memref.load %arg3[%8] : memref<2xi32, #tpu.memory_space<smem>>
    %10 = arith.cmpi slt, %arg1, %9 : i32
    %11 = arith.extui %10 : i1 to i32
    %c0_i32_4 = arith.constant 0 : i32
    %12 = arith.cmpi ne, %11, %c0_i32_4 : i32
    scf.if %12 {
      %c0 = arith.constant 0 : index
      %c0_9 = arith.constant 0 : index
      %21 = vector.load %arg4[%c0, %c0_9] : memref<128x128xi8, #tpu.memory_space<vmem>>, vector<128x128xi8>
      %22 = arith.sitofp %21 : vector<128x128xi8> to vector<128x128xbf16>
      %c0_10 = arith.constant 0 : index
      %c0_11 = arith.constant 0 : index
      %23 = vector.load %arg14[%c0_10, %c0_11] : memref<128x128xf32, #tpu.memory_space<vmem>>, vector<128x128xf32>
      %c0_12 = arith.constant 0 : index
      %c0_13 = arith.constant 0 : index
      %24 = vector.load %arg6[%c0_12, %c0_13] : memref<128x128xbf16, #tpu.memory_space<vmem>>, vector<128x128xbf16>
      %cst = arith.constant dense<0.000000e+00> : vector<128x128xf32>
      %25 = tpu.matmul %22, %24, %cst {dimension_numbers = #tpu.dot_dimension_numbers<[1], [0], [0], [1], [0, 0, 1, 1], [], []>} : vector<128x128xbf16>, vector<128x128xbf16>, vector<128x128xf32> -> vector<128x128xf32>
      %26 = arith.addf %23, %25 : vector<128x128xf32>
      %c0_14 = arith.constant 0 : index
      %c0_15 = arith.constant 0 : index
      %27 = vector.load %arg14[%c0_14, %c0_15] : memref<128x128xf32, #tpu.memory_space<vmem>>, vector<128x128xf32>
      tpu.vector_store %arg14[%c0_14, %c0_15], %26 {strides = array<i32>} : memref<128x128xf32, #tpu.memory_space<vmem>>, vector<128x128xf32>,
    } else {
    }
    %c1_i32 = arith.constant 1 : i32
    %13 = arith.cmpi eq, %arg1, %c1_i32 : i32
    %14 = arith.extui %13 : i1 to i32
    %c0_i32_5 = arith.constant 0 : i32
    %15 = arith.cmpi ne, %14, %c0_i32_5 : i32
    scf.if %15 {
      %c0 = arith.constant 0 : index
      %c0_9 = arith.constant 0 : index
      %21 = vector.load %arg14[%c0, %c0_9] : memref<128x128xf32, #tpu.memory_space<vmem>>, vector<128x128xf32>
      %c0_10 = arith.constant 0 : index
      %c0_11 = arith.constant 0 : index
      %22 = vector.load %arg5[%c0_10, %c0_11] : memref<128x1xf32, #tpu.memory_space<vmem>>, vector<128x1xf32>
      %23 = vector.broadcast %22 : vector<128x1xf32> to vector<128x128xf32>
      %24 = arith.mulf %21, %23 : vector<128x128xf32>
      %c0_12 = arith.constant 0 : index
      %c0_13 = arith.constant 0 : index
      %25 = vector.load %arg9[%c0_12, %c0_13] : memref<1x128xf32, #tpu.memory_space<vmem>>, vector<1x128xf32>
      %26 = vector.broadcast %25 : vector<1x128xf32> to vector<128x128xf32>
      %27 = arith.addf %24, %26 : vector<128x128xf32>
      %cst = arith.constant 0.000000e+00 : f32
      %28 = vector.broadcast %cst : f32 to vector<128x128xf32>
      %29 = arith.maximumf %27, %28 : vector<128x128xf32>
      %c0_14 = arith.constant 0 : index
      %c0_15 = arith.constant 0 : index
      %30 = vector.load %arg15[%c0_14, %c0_15] : memref<8x128xf32, #tpu.memory_space<vmem>>, vector<8x128xf32>
      %c0_16 = arith.constant 0 : index
      %c0_17 = arith.constant 0 : index
      %31 = vector.load %arg7[%c0_16, %c0_17] : memref<8x128xbf16, #tpu.memory_space<vmem>>, vector<8x128xbf16>
      %32 = arith.truncf %29 : vector<128x128xf32> to vector<128x128xbf16>
      %cst_18 = arith.constant dense<0.000000e+00> : vector<8x128xf32>
      %33 = tpu.matmul %31, %32, %cst_18 {dimension_numbers = #tpu.dot_dimension_numbers<[1], [0], [0], [1], [0, 0, 1, 1], [], []>} : vector<8x128xbf16>, vector<128x128xbf16>, vector<8x128xf32> -> vector<8x128xf32>
      %34 = arith.addf %30, %33 : vector<8x128xf32>
      %c0_19 = arith.constant 0 : index
      %c0_20 = arith.constant 0 : index
      %35 = vector.load %arg15[%c0_19, %c0_20] : memref<8x128xf32, #tpu.memory_space<vmem>>, vector<8x128xf32>
      tpu.vector_store %arg15[%c0_19, %c0_20], %34 {strides = array<i32>} : memref<8x128xf32, #tpu.memory_space<vmem>>, vector<8x128xf32>,
    } else {
    }
    %c1_i32_6 = arith.constant 1 : i32
    %16 = arith.cmpi eq, %arg0, %c1_i32_6 : i32
    %c1_i32_7 = arith.constant 1 : i32
    %17 = arith.cmpi eq, %arg1, %c1_i32_7 : i32
    %18 = arith.andi %16, %17 : i1
    %19 = arith.extui %18 : i1 to i32
    %c0_i32_8 = arith.constant 0 : i32
    %20 = arith.cmpi ne, %19, %c0_i32_8 : i32
    scf.if %20 {
      %c0 = arith.constant 0 : index
      %c0_9 = arith.constant 0 : index
      %21 = vector.load %arg15[%c0, %c0_9] : memref<8x128xf32, #tpu.memory_space<vmem>>, vector<8x128xf32>
      %c0_10 = arith.constant 0 : index
      %c0_11 = arith.constant 0 : index
      %22 = vector.load %arg8[%c0_10, %c0_11] : memref<8x1xf32, #tpu.memory_space<vmem>>, vector<8x1xf32>
      %23 = vector.broadcast %22 : vector<8x1xf32> to vector<8x128xf32>
      %24 = arith.mulf %21, %23 : vector<8x128xf32>
      %c0_12 = arith.constant 0 : index
      %c0_13 = arith.constant 0 : index
      %25 = vector.load %arg13[%c0_12, %c0_13] : memref<8x128xf32, #tpu.memory_space<vmem>>, vector<8x128xf32>
      tpu.vector_store %arg13[%c0_12, %c0_13], %24 {strides = array<i32>} : memref<8x128xf32, #tpu.memory_space<vmem>>, vector<8x128xf32>,
      %c0_14 = arith.constant 0 : index
      %c0_15 = arith.constant 0 : index
      %26 = vector.load %arg10[%c0_14, %c0_15] : memref<128x128xf32, #tpu.memory_space<vmem>>, vector<128x128xf32>
      %cst = arith.constant dense<0.000000e+00> : vector<8x128xf32>
      %27 = tpu.matmul %24, %26, %cst {dimension_numbers = #tpu.dot_dimension_numbers<[1], [0], [0], [1], [0, 0, 1, 1], [], []>} : vector<8x128xf32>, vector<128x128xf32>, vector<8x128xf32> -> vector<8x128xf32>
      %c0_16 = arith.constant 0 : index
      %c0_17 = arith.constant 0 : index
      %28 = vector.load %arg11[%c0_16, %c0_17] : memref<1x128xf32, #tpu.memory_space<vmem>>, vector<1x128xf32>
      %29 = vector.broadcast %28 : vector<1x128xf32> to vector<8x128xf32>
      %30 = arith.addf %27, %29 : vector<8x128xf32>
      %c0_18 = arith.constant 0 : index
      %c0_19 = arith.constant 0 : index
      %31 = vector.load %arg12[%c0_18, %c0_19] : memref<8x128xf32, #tpu.memory_space<vmem>>, vector<8x128xf32>
      tpu.vector_store %arg12[%c0_18, %c0_19], %30 {strides = array<i32>} : memref<8x128xf32, #tpu.memory_space<vmem>>, vector<8x128xf32>,
    } else {
    }
    return
  }
  func.func @transform_0(%arg0: i32, %arg1: i32, %arg2: memref<4xi32, #tpu.memory_space<smem>>, %arg3: memref<2xi32, #tpu.memory_space<smem>>) -> (i32, i32) {
    %c2_i32 = arith.constant 2 : i32
    %0 = arith.muli %arg0, %c2_i32 : i32
    %1 = arith.addi %0, %arg1 : i32
    %2 = arith.index_cast %1 : i32 to index
    %3 = memref.load %arg2[%2] : memref<4xi32, #tpu.memory_space<smem>>
    %c0_i32 = arith.constant 0 : i32
    return %arg0, %3 : i32, i32
  }
  func.func @transform_1(%arg0: i32, %arg1: i32, %arg2: memref<4xi32, #tpu.memory_space<smem>>, %arg3: memref<2xi32, #tpu.memory_space<smem>>) -> (i32, i32) {
    %c0_i32 = arith.constant 0 : i32
    %c0_i32_0 = arith.constant 0 : i32
    return %arg0, %c0_i32 : i32, i32
  }
  func.func @transform_2(%arg0: i32, %arg1: i32, %arg2: memref<4xi32, #tpu.memory_space<smem>>, %arg3: memref<2xi32, #tpu.memory_space<smem>>) -> (i32, i32) {
    %c2_i32 = arith.constant 2 : i32
    %0 = arith.muli %arg0, %c2_i32 : i32
    %1 = arith.addi %0, %arg1 : i32
    %2 = arith.index_cast %1 : i32 to index
    %3 = memref.load %arg2[%2] : memref<4xi32, #tpu.memory_space<smem>>
    %c0_i32 = arith.constant 0 : i32
    %c0_i32_0 = arith.constant 0 : i32
    return %3, %c0_i32 : i32, i32
  }
  func.func @transform_3(%arg0: i32, %arg1: i32, %arg2: memref<4xi32, #tpu.memory_space<smem>>, %arg3: memref<2xi32, #tpu.memory_space<smem>>) -> (i32, i32) {
    %c0_i32 = arith.constant 0 : i32
    %c0_i32_0 = arith.constant 0 : i32
    return %c0_i32, %arg0 : i32, i32
  }
  func.func @transform_4(%arg0: i32, %arg1: i32, %arg2: memref<4xi32, #tpu.memory_space<smem>>, %arg3: memref<2xi32, #tpu.memory_space<smem>>) -> (i32, i32) {
    %c0_i32 = arith.constant 0 : i32
    %c0_i32_0 = arith.constant 0 : i32
    %c0_i32_1 = arith.constant 0 : i32
    return %c0_i32, %c0_i32_0 : i32, i32
  }
  func.func @transform_5(%arg0: i32, %arg1: i32, %arg2: memref<4xi32, #tpu.memory_space<smem>>, %arg3: memref<2xi32, #tpu.memory_space<smem>>) -> (i32, i32) {
    %c0_i32 = arith.constant 0 : i32
    %c0_i32_0 = arith.constant 0 : i32
    %c0_i32_1 = arith.constant 0 : i32
    return %c0_i32, %c0_i32_0 : i32, i32
  }
  func.func @transform_6(%arg0: i32, %arg1: i32, %arg2: memref<4xi32, #tpu.memory_space<smem>>, %arg3: memref<2xi32, #tpu.memory_space<smem>>) -> (i32, i32) {
    %c0_i32 = arith.constant 0 : i32
    %c0_i32_0 = arith.constant 0 : i32
    %c0_i32_1 = arith.constant 0 : i32
    return %c0_i32, %c0_i32_0 : i32, i32
  }
  func.func @transform_7(%arg0: i32, %arg1: i32, %arg2: memref<4xi32, #tpu.memory_space<smem>>, %arg3: memref<2xi32, #tpu.memory_space<smem>>) -> (i32, i32) {
    %c0_i32 = arith.constant 0 : i32
    %c0_i32_0 = arith.constant 0 : i32
    %c0_i32_1 = arith.constant 0 : i32
    return %c0_i32, %c0_i32_0 : i32, i32
  }
  func.func @transform_8(%arg0: i32, %arg1: i32, %arg2: memref<4xi32, #tpu.memory_space<smem>>, %arg3: memref<2xi32, #tpu.memory_space<smem>>) -> (i32, i32) {
    %c0_i32 = arith.constant 0 : i32
    %c0_i32_0 = arith.constant 0 : i32
    %c0_i32_1 = arith.constant 0 : i32
    return %c0_i32, %c0_i32_0 : i32, i32
  }
  func.func @transform_9(%arg0: i32, %arg1: i32, %arg2: memref<4xi32, #tpu.memory_space<smem>>, %arg3: memref<2xi32, #tpu.memory_space<smem>>) -> (i32, i32) {
    %c0_i32 = arith.constant 0 : i32
    %c0_i32_0 = arith.constant 0 : i32
    %c0_i32_1 = arith.constant 0 : i32
    return %c0_i32, %c0_i32_0 : i32, i32
  }
}

</mosaic_0001>

<bundles_post_ra>
// kernel: _gcn_forward_impl.1
= control target key start
LH: loop header
LB: loop body
LE: loop exit
PB: predicated region body
PF: predicated region fallthrough
CT: control target
= control target key end

     0   :  { %s1837_s0 = inlined_call_operand.vmem [shape: s32[4], index: 0, kind: input, shape index: {}]   ;;  %s1838_s2 = inlined_call_operand.vmem [shape: s8[256,256], index: 2, kind: input, shape index: {}]   ;;  %s1839_s3 = inlined_call_operand.vmem [shape: f32[256,1], index: 3, kind: input, shape index: {}]   ;;  %s1840_s4 = inlined_call_operand.vmem [shape: bf16[256,128], index: 4, kind: input, shape index: {}]   ;;  %s1841_s5 = inlined_call_operand.vmem [shape: bf16[8,256], index: 5, kind: input, shape index: {}]   ;;  %s1842_s6 = inlined_call_operand.vmem [shape: f32[8,1], index: 6, kind: input, shape index: {}]   ;;  %s1843_s7 = inlined_call_operand.vmem [shape: f32[1,128], index: 7, kind: input, shape index: {}]   ;;  %s1844_s8 = inlined_call_operand.vmem [shape: f32[128,128], index: 8, kind: input, shape index: {}]   ;;  %s1845_s9 = inlined_call_operand.vmem [shape: f32[1,128], index: 9, kind: input, shape index: {}]   ;;  %s1846_s10 = inlined_call_operand.vmem [shape: f32[8,128], index: 10, kind: output, shape index: {0}]   ;;  %s1847_s11 = inlined_call_operand.vmem [shape: f32[8,128], index: 11, kind: output, shape index: {1}]   ;;  %s1848_s1 = inlined_call_operand.vmem [shape: s32[2], index: 1, kind: input, shape index: {}]  }
   0x1   :  { %1851 = sst [smem:[#allocation11_spill]] %s1845_s9  ;;  %s17_s19 = sshll.u32 %s1837_s0, 4  ;;  %s18_s19 = int_to_ptr.vmem [resolvable:$true] %s17_s19 }
   0x2   :  { %1852 = sst [smem:[#allocation12_spill]] %s1846_s10  ;;  %s21_s22 = sshll.u32 %s1848_s1, 4  ;;  %s22_s22 = int_to_ptr.vmem [resolvable:$true] %s21_s22 }
   0x3   :  { %s1442_s23 = scalar_lea.vmem %s18_s19, 16  ;;  %p1447_p1 = scmp.lt.s32.totalorder %s18_s19, %s18_s19 }
   0x4   :  { %p1443_p0 = scmp.ne.s32.totalorder %s18_s19, %s1442_s23  ;;  %p1448_p2 = scmp.lt.s32.totalorder %s1442_s23, %s1442_s23 }
   0x6   :  { %p1449_p3 = por %p1448_p2, %p1447_p1 }
   0x8   :  { %p1450_p4 = pnand %p1449_p3, %p1443_p0 }
   0xa   :  { %1453 = shalt.err (!%p1450_p4)  }
   0xb   :  { %s1524_s24 = smov [#allocation5]   ;;  %s1454_s25 = scalar_lea.vmem %s22_s22, 16 }
   0xc   :  { %20 = dma.vmem_to_smem %s18_s19, 16, %s1524_s24, [#allocation4] }
   0xd   :  { %p1455_p5 = scmp.ne.s32.totalorder %s22_s22, %s1454_s25  ;;  %p1459_p6 = scmp.lt.s32.totalorder %s22_s22, %s22_s22 }
   0xe   :  { %p1460_p7 = scmp.lt.s32.totalorder %s1454_s25, %s1454_s25 }
  0x10   :  { %p1461_p8 = por %p1460_p7, %p1459_p6 }
  0x12   :  { %p1462_p9 = pnand %p1461_p8, %p1455_p5 }
  0x14   :  { %1465 = shalt.err (!%p1462_p9)  }
  0x15   :  { %s1525_s0 = smov [#allocation6]  }
  0x16   :  { %24 = dma.vmem_to_smem %s22_s22, 16, %s1525_s0, [#allocation4] }
  0x17   :  { %1494 = dma.done.wait [#allocation4], 32 }
  0x18   :  { %1495 = vsyncadd [#allocation4], 4294967264 }
  0x19   :  { %26 = sfence }
  0x1a   :  { %s1601_s1 = smov 0   ;;  %s1603_s26 = smov 0  }
  0x1b   :  { %s1605_s27 = smov 0   ;;  %s1607_s28 = smov 0  }
  0x1c   :  { %s1609_s29 = smov 0   ;;  %s1611_s30 = smov 0  }
  0x1d   :  { %s1613_s12 = smov 0  }
  0x1e LB: > { %1853 = sst [smem:[#allocation9_spill]] %s1514_s29  ;;  %s41_s13 = sadd.s32 1, %s1514_s29  ;;  %s1522_s12 = sphi %s1613_s12, %s32_s12   ;;  %s1518_s30 = sphi %s1611_s30, %s1863_s30   ;;  %s1514_s29 = sphi %s1609_s29, %s1862_s29   ;;  %s1510_s28 = sphi %s1607_s28, %s1861_s28   ;;  %s1506_s27 = sphi %s1605_s27, %s1857_s27   ;;  %s1502_s26 = sphi %s1603_s26, %s1860_s26   ;;  %s1498_s1 = sphi %s1601_s1, %s1859_s1  }
  0x1f   : > { %p42_p10 = scmp.ge.s32.totalorder %s41_s13, 2  ;;  %s44_s14 = sadd.s32 1, %s1518_s30 }
  0x20   : > { %s1160_s15 = sshll.u32 %s1518_s30, 1  ;;  %p66_p11 = scmp.ne.s32.totalorder %s1502_s26, %s1498_s1 }
  0x21   : > { %s1865_s14 = smov (!%p42_p10, %s44_s14), %s1518_s30  ;;  %s49_s16 = sadd.s32 %s1514_s29, %s1160_s15 }
  0x22   : > { %p46_p12 = scmp.ge.s32.totalorder %s1865_s14, 2  ;;  %p67_p13 = scmp.eq.s32.totalorder %s1522_s12, 0 }
  0x23   : > { %s1867_s13 = smov (%p42_p10, %s41_s13), 0  ;;  %s50_s17 = sld [smem:[#allocation5 + %s49_s16]] }
  0x24   : > { %s1869_s14 = smov (%p46_p12, %s1865_s14), 0  ;;  %p68_p0 = por %p67_p13, %p66_p11 }
  0x25   : > { %1854 = sst [smem:[#allocation10_spill]] %s1869_s14  ;;  %s1161_s18 = sshll.u32 %s1869_s14, 1 }
  0x26   : > { %s52_s19 = sadd.s32 %s1161_s18, %s1867_s13  ;;  %s54_s21 = ssub.s32 %s1518_s30, %s1869_s14 }
  0x27   : > { %s53_s20 = sld [smem:[#allocation5 + %s52_s19]]  ;;  %s59_s24 = sadd.s32 1, %s1502_s26 }
  0x28   : > { %p1165_p2 = scmp.ge.s32.totalorder %s1522_s12, 4 }
  0x2b   : > { %314 = sbr.rel (%p1165_p2) target bundleno = 62 (0x3e), region = 32 }
  0x2d   : > { %s55_s22 = ssub.s32 %s50_s17, %s53_s20 }
  0x2e   : > { %s56_s23 = sor.u32 %s55_s22, %s54_s21 }
  0x2f   : > { %p57_p1 = scmp.eq.s32.totalorder %s56_s23, 0 }
  0x31   : > { %s1654_s25 = scalar_select %p57_p1, %s1502_s26, %s59_s24  }
  0x32   : > { %317 = sbr.rel (!%p68_p0) target bundleno = 62 (0x3e), region = 36  ;;  %s324_s0 = sld [smem:[#allocation5 + %s49_s16]] (%p68_p0) }
  0x33   : > { %s319_s15 = sand.u32 (%p68_p0), 1, %s1502_s26   ;;  %s1194_s29 = sshll.u32 (%p68_p0), %s1518_s30, 3 }
  0x34   : > { %s1166_s10 = sshll.u32 (%p68_p0), %s319_s15, 5 }
  0x35   : > { %s321_s20 = scalar_lea.vmem (%p68_p0), [#allocation7], %s1166_s10 }
  0x38   : > { %s327_s9 = sadd.s32 (%p68_p0), %s1194_s29, %s324_s0 }
  0x39   : > { %s1170_s18 = sshll.u32 %s327_s9, 3 }
  0x3a   : > { %s329_s17 = scalar_lea.vmem %s1838_s2, %s1170_s18 }
  0x3b   : > { %v363_v0 = vld [vmem:[%s329_s17] sm:$0xff]  ;;  %v365_v1 = vld [vmem:[%s329_s17 + $0x10] sm:$0xff] }
  0x3c   : > { %v367_v2 = vld [vmem:[%s329_s17 + $0x20] sm:$0xff]  ;;  %364 = vst [vmem:[%s321_s20] sm:$0xff] %v363_v0  ;;  %366 = vst [vmem:[%s321_s20 + $0x8] sm:$0xff] %v365_v1  ;;  %v369_v3 = vld [vmem:[%s329_s17 + $0x30] sm:$0xff] }
  0x3d   : > { %368 = vst [vmem:[%s321_s20 + $0x10] sm:$0xff] %v367_v2  ;;  %370 = vst [vmem:[%s321_s20 + $0x18] sm:$0xff] %v369_v3 }
  0x3e PF: > { %p1171_p3 = scmp.ge.s32.totalorder %s1522_s12, 1  ;;  %p406_p4 = scmp.lt.s32.totalorder %s1522_s12, 5 }
  0x40   : > { %p407_p5 = pnand %p1171_p3, %p406_p4 }
  0x41   : > { %s413_s9 = sand.u32 (!%p407_p5), 1, %s1498_s1   ;;  %s1173_s10 = sshll.u32 (!%p407_p5), %s1510_s28, 4 }
  0x42   : > { %410 = sbr.rel (%p407_p5) target bundleno = 1100 (0x44c), region = 86  ;;  %s1172_s29 = sshll.u32 (!%p407_p5), %s413_s9, 5 }
  0x43   : > { %p465_p6 = scmp.lt.s32.totalorder (!%p407_p5), %s1173_s10, 31  ;;  %s1175_s14 = sshll.u32 (!%p407_p5), %s1510_s28, 1 }
  0x44   : > { %s471_s16 = sadd.s32 (!%p407_p5), %s1506_s27, %s1175_s14  ;;  %p482_p7 = scmp.lt.s32.totalorder (!%p407_p5), %s1510_s28, 1 }
  0x45   : > { %s472_s22 = sld [smem:[#allocation5 + %s471_s16]] (!%p407_p5)  ;;  %p487_p8 = scmp.eq.s32.totalorder (!%p407_p5), %s1510_s28, 0 }
  0x46   : > { %p488_p9 = scmp.eq.s32.totalorder (!%p407_p5), %s1506_s27, 0 }
  0x48   : > { %p489_p10 = pnand (!%p407_p5), %p488_p9, %p487_p8 }
  0x49   : > { %s1871_s10 = smov (!%p465_p6, %s1173_s10), 31  ;;  %v1526_v4 = vmov (!%p489_p10), 0.0  }
  0x4a   : > { %s1174_s21 = sshll.u32 %s1871_s10, 3  ;;  %493 = vst [vmem:[#allocation3] sm:$0xff] (!%p489_p10), %v1526_v4 }
  0x4b   : > { %s1672_s0 = scalar_lea.vmem %s1839_s3, %s1174_s21  ;;  %s1176_s20 = sshll.u32 %s472_s22, 4 }
  0x4c   : > { %s483_s15 = scalar_select %p482_p7, %s1510_s28, 1 }
  0x4d   : > { %p474_p11 = scmp.lt.s32.totalorder %s1176_s20, 31  ;;  %s1687_s21 = scalar_lea.vmem [#allocation7], %s1172_s29 }
  0x4e   : > { %s1178_s18 = sshll.u32 %s483_s15, 2  ;;  %492 = sbr.rel (%p489_p10) target bundleno = 85 (0x55), region = 94 }
  0x4f   : > { %s1680_s17 = scalar_lea.vmem %s1841_s5, %s1178_s18  ;;  %s1873_s20 = smov (!%p474_p11, %s1176_s20), 31 }
  0x50   : > { %s1177_s9 = sshll.u32 %s1873_s20, 2 }
  0x51   : > { %s1685_s16 = scalar_lea.vmem %s1840_s4, %s1177_s9 }
  0x55 PF: > { %p1179_p12 = scmp.ne.s32.totalorder %s1506_s27, 0 }
  0x56   : > { %v1527_v5 = vmov (!%p1179_p12), 0.0  }
  0x57   : > { %496 = sbr.rel (%p1179_p12) target bundleno = 95 (0x5f), region = 98  ;;  %497 = vst [vmem:[#allocation2] sm:$0xff] (!%p1179_p12), %v1527_v5  ;;  %498 = vst [vmem:[#allocation2 + $0x8] sm:$0xff] (!%p1179_p12), %v1527_v5 }
  0x58   : > { %499 = vst [vmem:[#allocation2 + $0x10] sm:$0xff] (!%p1179_p12), %v1527_v5  ;;  %500 = vst [vmem:[#allocation2 + $0x18] sm:$0xff] (!%p1179_p12), %v1527_v5 }
  0x59   : > { %501 = vst [vmem:[#allocation2 + $0x20] sm:$0xff] (!%p1179_p12), %v1527_v5  ;;  %502 = vst [vmem:[#allocation2 + $0x28] sm:$0xff] (!%p1179_p12), %v1527_v5 }
  0x5a   : > { %503 = vst [vmem:[#allocation2 + $0x30] sm:$0xff] (!%p1179_p12), %v1527_v5  ;;  %504 = vst [vmem:[#allocation2 + $0x38] sm:$0xff] (!%p1179_p12), %v1527_v5 }
  0x5b   : > { %505 = vst [vmem:[#allocation2 + $0x40] sm:$0xff] (!%p1179_p12), %v1527_v5  ;;  %506 = vst [vmem:[#allocation2 + $0x48] sm:$0xff] (!%p1179_p12), %v1527_v5 }
  0x5c   : > { %507 = vst [vmem:[#allocation2 + $0x50] sm:$0xff] (!%p1179_p12), %v1527_v5  ;;  %508 = vst [vmem:[#allocation2 + $0x58] sm:$0xff] (!%p1179_p12), %v1527_v5 }
  0x5d   : > { %509 = vst [vmem:[#allocation2 + $0x60] sm:$0xff] (!%p1179_p12), %v1527_v5  ;;  %510 = vst [vmem:[#allocation2 + $0x68] sm:$0xff] (!%p1179_p12), %v1527_v5 }
  0x5e   : > { %511 = vst [vmem:[#allocation2 + $0x70] sm:$0xff] %v1527_v5  ;;  %512 = vst [vmem:[#allocation2 + $0x78] sm:$0xff] %v1527_v5 }
  0x5f PF: > { %s513_s29 = sld [smem:[#allocation6 + %s1510_s28]] }
  0x65   : > { %p1180_p13 = scmp.ge.s32.totalorder %s1506_s27, %s513_s29 }
  0x66   : > { %v1431_v6 = vld [vmem:[%s1685_s16] sm:$0xff] (!%p1180_p13)   ;;  %v1432_v7 = vld [vmem:[%s1685_s16 + $0x8] sm:$0xff] (!%p1180_p13)   ;;  %v1433_v8 = vld [vmem:[%s1685_s16 + $0x10] sm:$0xff] (!%p1180_p13)  }
  0x67   : > { %517 = sbr.rel (%p1180_p13) target bundleno = 361 (0x169), region = 102  ;;  %1237 = vmatprep.subr.bf16.mxu0 (!%p1180_p13), %v1431_v6  ;;  %1348 = vmatprep.subr.bf16.mxu1 (!%p1180_p13), %v1431_v6  ;;  %v1434_v9 = vld [vmem:[%s1685_s16 + $0x18] sm:$0xff] (!%p1180_p13)   ;;  %v518_v10 = vld [vmem:[%s1687_s21] sm:$0xff] (!%p1180_p13)  ;;  %v1435_v14 = vld [vmem:[%s1685_s16 + $0x20] sm:$0xff] (!%p1180_p13)  }
  0x68   : > { %1238 = vmatpush3.bf16.msra.mxu0 (!%p1180_p13), %v1431_v6  ;;  %1356 = vmatpush3.bf16.msra.mxu1 (!%p1180_p13), %v1431_v6  ;;  %v520_v11 = vld [vmem:[%s1687_s21 + $0x10] sm:$0xff] (!%p1180_p13)  ;;  %v522_v12 = vunpack.c.l.s8.bf16 (!%p1180_p13), %v518_v10  ;;  %v1436_v15 = vld [vmem:[%s1685_s16 + $0x28] sm:$0xff] (!%p1180_p13)   ;;  %v1437_v16 = vld [vmem:[%s1685_s16 + $0x30] sm:$0xff] (!%p1180_p13)   ;;  %v523_v20 = vunpack.c.h.s8.bf16 (!%p1180_p13), %v518_v10 }
  0x69   : > { %1239 = vmatprep.subr.bf16.mxu0 (!%p1180_p13), %v1432_v7  ;;  %1349 = vmatprep.subr.bf16.mxu1 (!%p1180_p13), %v1432_v7  ;;  %v526_v13 = vunpack.c.l.s8.bf16 (!%p1180_p13), %v520_v11  ;;  %v1438_v17 = vld [vmem:[%s1685_s16 + $0x38] sm:$0xff] (!%p1180_p13)   ;;  %v519_v18 = vld [vmem:[%s1687_s21 + $0x8] sm:$0xff] (!%p1180_p13)  ;;  %v521_v19 = vld [vmem:[%s1687_s21 + $0x18] sm:$0xff] (!%p1180_p13)  ;;  %v527_v21 = vunpack.c.h.s8.bf16 (!%p1180_p13), %v520_v11 }
  0x6a   : > { %1253 = vmatprep.mubr.bf16.mxu0 (!%p1180_p13), %v522_v12  ;;  %v524_v22 = vunpack.c.l.s8.bf16 (!%p1180_p13), %v519_v18  ;;  %v528_v23 = vunpack.c.l.s8.bf16 (!%p1180_p13), %v521_v19  ;;  %v525_v24 = vunpack.c.h.s8.bf16 (!%p1180_p13), %v519_v18  ;;  %v529_v25 = vunpack.c.h.s8.bf16 (!%p1180_p13), %v521_v19  ;;  %v532_v26 = vld [vmem:[#allocation2 + $0x10] sm:$0xff] (!%p1180_p13)  ;;  %v530_v28 = vld [vmem:[#allocation2] sm:$0xff] (!%p1180_p13)  ;;  %v533_v32 = vld [vmem:[#allocation2 + $0x18] sm:$0xff] (!%p1180_p13) }
  0x6b   : > { %1261 = vmatprep.mubr.bf16.mxu1 (!%p1180_p13), %v526_v13  ;;  %v540_v27 = vld [vmem:[#allocation2 + $0x50] sm:$0xff] (!%p1180_p13)  ;;  %v538_v29 = vld [vmem:[#allocation2 + $0x40] sm:$0xff] (!%p1180_p13)  ;;  %v541_v33 = vld [vmem:[#allocation2 + $0x58] sm:$0xff] (!%p1180_p13) }
  0x6c   : > { %1240 = vmatpush3.bf16.msra.mxu0 (!%p1180_p13), %v1432_v7  ;;  %1357 = vmatpush3.bf16.msra.mxu1 (!%p1180_p13), %v1432_v7  ;;  %v531_v38 = vld [vmem:[#allocation2 + $0x8] sm:$0xff] (!%p1180_p13)  ;;  %v536_v50 = vld [vmem:[#allocation2 + $0x30] sm:$0xff] (!%p1180_p13)  ;;  %v534_v52 = vld [vmem:[#allocation2 + $0x20] sm:$0xff] (!%p1180_p13) }
  0x6d   : > { %1241 = vmatprep.subr.bf16.mxu0 (!%p1180_p13), %v1433_v8  ;;  %1350 = vmatprep.subr.bf16.mxu1 (!%p1180_p13), %v1433_v8  ;;  %v539_v39 = vld [vmem:[#allocation2 + $0x48] sm:$0xff] (!%p1180_p13)  ;;  %v544_v51 = vld [vmem:[#allocation2 + $0x70] sm:$0xff] (!%p1180_p13)  ;;  %v542_v53 = vld [vmem:[#allocation2 + $0x60] sm:$0xff] (!%p1180_p13) }
  0x6e   : > { %v537_v56 = vld [vmem:[#allocation2 + $0x38] sm:$0xff]  ;;  %v535_v62 = vld [vmem:[#allocation2 + $0x28] sm:$0xff] }
  0x6f   : > { %v545_v57 = vld [vmem:[#allocation2 + $0x78] sm:$0xff]  ;;  %v543_v63 = vld [vmem:[#allocation2 + $0x68] sm:$0xff] }
  0x70   : > { %1242 = vmatpush3.bf16.msra.mxu0 %v1433_v8  ;;  %1358 = vmatpush3.bf16.msra.mxu1 %v1433_v8 }
  0x71   : > { %1243 = vmatprep.subr.bf16.mxu0 %v1434_v9  ;;  %1351 = vmatprep.subr.bf16.mxu1 %v1434_v9 }
  0x74   : > { %1244 = vmatpush3.bf16.msra.mxu0 %v1434_v9  ;;  %1359 = vmatpush3.bf16.msra.mxu1 %v1434_v9 }
  0x75   : > { %1245 = vmatprep.subr.bf16.mxu0 %v1435_v14  ;;  %1352 = vmatprep.subr.bf16.mxu1 %v1435_v14 }
  0x78   : > { %1246 = vmatpush3.bf16.msra.mxu0 %v1435_v14  ;;  %1360 = vmatpush3.bf16.msra.mxu1 %v1435_v14 }
  0x79   : > { %1247 = vmatprep.subr.bf16.mxu0 %v1436_v15  ;;  %1353 = vmatprep.subr.bf16.mxu1 %v1436_v15 }
  0x7c   : > { %1248 = vmatpush3.bf16.msra.mxu0 %v1436_v15  ;;  %1361 = vmatpush3.bf16.msra.mxu1 %v1436_v15 }
  0x7d   : > { %1249 = vmatprep.subr.bf16.mxu0 %v1437_v16  ;;  %1354 = vmatprep.subr.bf16.mxu1 %v1437_v16 }
  0x80   : > { %1250 = vmatpush3.bf16.msra.mxu0 %v1437_v16  ;;  %1362 = vmatpush3.bf16.msra.mxu1 %v1437_v16 }
  0x81   : > { %1251 = vmatprep.subr.bf16.mxu0 %v1438_v17  ;;  %1355 = vmatprep.subr.bf16.mxu1 %v1438_v17 }
  0x84   : > { %1252 = vmatpush3.bf16.msra.mxu0 %v1438_v17  ;;  %1363 = vmatpush3.bf16.msra.mxu1 %v1438_v17 }
  0x87   : > { %1254 = vmatmul.mubr.bf16.vlgmr.msra.gmra.mrb[0].mxu0 %v523_v20  ;;  %1262 = vmatmul.mubr.bf16.vlgmr.msra.gmra.mrb[0].mxu1 %v527_v21 }
  0x88   : > { %1257 = vmatprep.mubr.bf16.mxu0 %v524_v22  ;;  %1265 = vmatprep.mubr.bf16.mxu1 %v528_v23 }
  0x8f   : > { %1258 = vmatmul.mubr.bf16.gmra.mrb[4].mxu0 %v525_v24  ;;  %1266 = vmatmul.mubr.bf16.gmra.mrb[4].mxu1 %v529_v25 }
 0x15a   : > { %v1255_v30 = vpop.f32.mrb[0].mxu0  ;;  %v1263_v31 = vpop.f32.mrb[0].mxu1 }
 0x15b   : > { %v709_v34 = vadd.f32 %v1255_v30, %v532_v26  ;;  %v717_v35 = vadd.f32 %v1263_v31, %v540_v27  ;;  %v644_v36 = vpop.f32.mrb[1].mxu0  ;;  %v676_v37 = vpop.f32.mrb[1].mxu1 }
 0x15c   : > { %v707_v40 = vadd.f32 %v644_v36, %v530_v28  ;;  %v715_v41 = vadd.f32 %v676_v37, %v538_v29  ;;  %v1256_v42 = vpop.f32.mrb[2].mxu0  ;;  %v1264_v43 = vpop.f32.mrb[2].mxu1 }
 0x15d   : > { %725 = vst [vmem:[#allocation2 + $0x10] sm:$0xff] %v709_v34  ;;  %733 = vst [vmem:[#allocation2 + $0x50] sm:$0xff] %v717_v35  ;;  %v710_v44 = vadd.f32 %v1256_v42, %v533_v32  ;;  %v718_v45 = vadd.f32 %v1264_v43, %v541_v33  ;;  %v647_v46 = vpop.f32.mrb[3].mxu0  ;;  %v679_v47 = vpop.f32.mrb[3].mxu1 }
 0x15e   : > { %723 = vst [vmem:[#allocation2] sm:$0xff] %v707_v40  ;;  %731 = vst [vmem:[#allocation2 + $0x40] sm:$0xff] %v715_v41  ;;  %v708_v48 = vadd.f32 %v647_v46, %v531_v38  ;;  %v716_v49 = vadd.f32 %v679_v47, %v539_v39 }
 0x15f   : > { %726 = vst [vmem:[#allocation2 + $0x18] sm:$0xff] %v710_v44  ;;  %734 = vst [vmem:[#allocation2 + $0x58] sm:$0xff] %v718_v45 }
 0x160   : > { %724 = vst [vmem:[#allocation2 + $0x8] sm:$0xff] %v708_v48  ;;  %732 = vst [vmem:[#allocation2 + $0x48] sm:$0xff] %v716_v49 }
 0x162   : > { %v1259_v54 = vpop.f32.mrb[4].mxu0  ;;  %v1267_v55 = vpop.f32.mrb[4].mxu1 }
 0x163   : > { %v713_v58 = vadd.f32 %v1259_v54, %v536_v50  ;;  %v721_v59 = vadd.f32 %v1267_v55, %v544_v51  ;;  %v660_v60 = vpop.f32.mrb[5].mxu0  ;;  %v692_v61 = vpop.f32.mrb[5].mxu1 }
 0x164   : > { %v711_v0 = vadd.f32 %v660_v60, %v534_v52  ;;  %v719_v1 = vadd.f32 %v692_v61, %v542_v53  ;;  %v1260_v2 = vpop.f32.mrb[6].mxu0  ;;  %v1268_v3 = vpop.f32.mrb[6].mxu1 }
 0x165   : > { %729 = vst [vmem:[#allocation2 + $0x30] sm:$0xff] %v713_v58  ;;  %737 = vst [vmem:[#allocation2 + $0x70] sm:$0xff] %v721_v59  ;;  %v714_v4 = vadd.f32 %v1260_v2, %v537_v56  ;;  %v722_v5 = vadd.f32 %v1268_v3, %v545_v57  ;;  %v663_v6 = vpop.f32.mrb[7].mxu0  ;;  %v695_v7 = vpop.f32.mrb[7].mxu1 }
 0x166   : > { %727 = vst [vmem:[#allocation2 + $0x20] sm:$0xff] %v711_v0  ;;  %735 = vst [vmem:[#allocation2 + $0x60] sm:$0xff] %v719_v1  ;;  %v712_v8 = vadd.f32 %v663_v6, %v535_v62  ;;  %v720_v9 = vadd.f32 %v695_v7, %v543_v63 }
 0x167   : > { %730 = vst [vmem:[#allocation2 + $0x38] sm:$0xff] %v714_v4  ;;  %738 = vst [vmem:[#allocation2 + $0x78] sm:$0xff] %v722_v5 }
 0x168   : > { %728 = vst [vmem:[#allocation2 + $0x28] sm:$0xff] %v712_v8  ;;  %736 = vst [vmem:[#allocation2 + $0x68] sm:$0xff] %v720_v9 }
 0x169 PF: > { %p739_p0 = scmp.eq.s32.totalorder %s1506_s27, 1  ;;  %p1189_p1 = scmp.ne.s32.totalorder %s1506_s27, 1 }
 0x16a   : > { %v761_v10 = vld [vmem:[%s1672_s0 + $0x10] sm:$0xff] (!%p1189_p1)  ;;  %v759_v11 = vld [vmem:[%s1672_s0] sm:$0xff] (!%p1189_p1)  ;;  %v1528_v12 = vmov (!%p1189_p1), 0   ;;  %v762_v13 = vld [vmem:[%s1672_s0 + $0x18] sm:$0xff] (!%p1189_p1)  ;;  %v1529_v19 = vmov (!%p1189_p1), 0.0   ;;  %vm1530_vm0 = vmmov (!%p1189_p1), 0  }
 0x16b   : > { %742 = sbr.rel (%p1189_p1) target bundleno = 750 (0x2ee), region = 106  ;;  %1440 = vset.pattern.permute.xlu1 (!%p1189_p1), %v1528_v12  ;;  %1439 = vset.pattern.permute.xlu0 (!%p1189_p1), %v1528_v12  ;;  %v760_v14 = vld [vmem:[%s1672_s0 + $0x8] sm:$0xff] (!%p1189_p1)  ;;  %v763_v16 = vld [vmem:[%s1672_s0 + $0x20] sm:$0xff] (!%p1189_p1)  ;;  %v766_v17 = vld [vmem:[%s1672_s0 + $0x38] sm:$0xff] (!%p1189_p1) }
 0x16c   : > { %787 = vperm.xlu1 (!%p1189_p1), %1440, %v761_v10   ;;  %777 = vperm.xlu0 (!%p1189_p1), %1439, %v759_v11   ;;  %v764_v15 = vld [vmem:[%s1672_s0 + $0x28] sm:$0xff] (!%p1189_p1)  ;;  %v765_v18 = vld [vmem:[%s1672_s0 + $0x30] sm:$0xff] (!%p1189_p1)  ;;  %v767_v21 = vld [vmem:[%s1672_s0 + $0x40] sm:$0xff] (!%p1189_p1) }
 0x16d   : > { %1269 = vmatprep.subr.bf16.mxu0 (!%p1189_p1), %v1529_v19  ;;  %v768_v20 = vld [vmem:[%s1672_s0 + $0x48] sm:$0xff] (!%p1189_p1)  ;;  %v770_v22 = vld [vmem:[%s1672_s0 + $0x58] sm:$0xff] (!%p1189_p1)  ;;  %v769_v23 = vld [vmem:[%s1672_s0 + $0x50] sm:$0xff] (!%p1189_p1)  ;;  %1285 = vmatprep.mubr.msk.bf16.mxu0 (!%p1189_p1), %vm1530_vm0, %v1529_v19 }
 0x16e   : > { %v772_v24 = vld [vmem:[%s1672_s0 + $0x68] sm:$0xff] (!%p1189_p1)  ;;  %v771_v25 = vld [vmem:[%s1672_s0 + $0x60] sm:$0xff] (!%p1189_p1)  ;;  %v774_v26 = vld [vmem:[%s1672_s0 + $0x78] sm:$0xff] (!%p1189_p1) }
 0x16f   : > { %v773_v27 = vld [vmem:[%s1672_s0 + $0x70] sm:$0xff] (!%p1189_p1)  ;;  %v743_v28 = vld [vmem:[#allocation2] sm:$0xff] (!%p1189_p1)  ;;  %v746_v35 = vld [vmem:[#allocation2 + $0x18] sm:$0xff] (!%p1189_p1) }
 0x170   : > { %792 = vperm.xlu1 (!%p1189_p1), %1440, %v762_v13   ;;  %782 = vperm.xlu0 (!%p1189_p1), %1439, %v760_v14   ;;  %v745_v29 = vld [vmem:[#allocation2 + $0x10] sm:$0xff] (!%p1189_p1)  ;;  %v1727_v33 = vld [vmem:[%s1843_s7] ss:$0 sm:$0xff] (!%p1189_p1)  ;;  %v744_v36 = vld [vmem:[#allocation2 + $0x8] sm:$0xff] (!%p1189_p1) }
 0x171   : > { %v748_v43 = vld [vmem:[#allocation2 + $0x28] sm:$0xff] (!%p1189_p1)  ;;  %v747_v44 = vld [vmem:[#allocation2 + $0x20] sm:$0xff] (!%p1189_p1)  ;;  %v750_v55 = vld [vmem:[#allocation2 + $0x38] sm:$0xff] (!%p1189_p1) }
 0x172   : > { %v749_v56 = vld [vmem:[#allocation2 + $0x30] sm:$0xff]  ;;  %v752_v0 = vld [vmem:[#allocation2 + $0x48] sm:$0xff]  ;;  %v751_v1 = vld [vmem:[#allocation2 + $0x40] sm:$0xff] }
 0x173   : > { %v754_v13 = vld [vmem:[#allocation2 + $0x58] sm:$0xff]  ;;  %v753_v14 = vld [vmem:[#allocation2 + $0x50] sm:$0xff] }
 0x174   : > { %802 = vperm.xlu1 %1440, %v764_v15   ;;  %797 = vperm.xlu0 %1439, %v763_v16  }
 0x178   : > { %812 = vperm.xlu1 %1440, %v766_v17   ;;  %807 = vperm.xlu0 %1439, %v765_v18  }
 0x17c   : > { %822 = vperm.xlu1 %1440, %v768_v20   ;;  %817 = vperm.xlu0 %1439, %v767_v21  }
 0x180   : > { %832 = vperm.xlu1 %1440, %v770_v22   ;;  %827 = vperm.xlu0 %1439, %v769_v23   ;;  %v756_v23 = vld [vmem:[#allocation2 + $0x68] sm:$0xff] }
 0x184   : > { %842 = vperm.xlu1 %1440, %v772_v24   ;;  %837 = vperm.xlu0 %1439, %v771_v25   ;;  %v755_v24 = vld [vmem:[#allocation2 + $0x60] sm:$0xff] }
 0x188   : > { %852 = vperm.xlu1 %1440, %v774_v26   ;;  %847 = vperm.xlu0 %1439, %v773_v27  }
 0x1eb   : > { %v788_v30 = vpop.permute.xlu1 %787  ;;  %v778_v31 = vpop.permute.xlu0 %777 }
 0x1ec   : > { %v855_v32 = vmul.f32 %v778_v31, %v743_v28  ;;  %v857_v34 = vmul.f32 %v788_v30, %v745_v29 }
 0x1ee   : > { %v878_v39 = vadd.f32 %v1727_v33, %v855_v32  ;;  %v880_v42 = vadd.f32 %v1727_v33, %v857_v34 }
 0x1ef   : > { %v793_v37 = vpop.permute.xlu1 %792  ;;  %v783_v38 = vpop.permute.xlu0 %782 }
 0x1f0   : > { %v858_v40 = vmul.f32 %v793_v37, %v746_v35  ;;  %v856_v41 = vmul.f32 %v783_v38, %v744_v36  ;;  %v894_v49 = vmax.f32 %v878_v39, 0.0  ;;  %v896_v53 = vmax.f32 %v880_v42, 0.0  ;;  %v758_v37 = vld [vmem:[#allocation2 + $0x78] sm:$0xff]  ;;  %v757_v38 = vld [vmem:[#allocation2 + $0x70] sm:$0xff] }
 0x1f2   : > { %v881_v45 = vadd.f32 %v1727_v33, %v858_v40  ;;  %v879_v46 = vadd.f32 %v1727_v33, %v856_v41 }
 0x1f3   : > { %v803_v47 = vpop.permute.xlu1 %802  ;;  %v798_v48 = vpop.permute.xlu0 %797 }
 0x1f4   : > { %v895_v50 = vmax.f32 %v879_v46, 0.0  ;;  %v860_v51 = vmul.f32 %v803_v47, %v748_v43  ;;  %v859_v52 = vmul.f32 %v798_v48, %v747_v44  ;;  %v897_v54 = vmax.f32 %v881_v45, 0.0 }
 0x1f6   : > { %v883_v57 = vadd.f32 %v1727_v33, %v860_v51  ;;  %v882_v58 = vadd.f32 %v1727_v33, %v859_v52  ;;  %v912_v59 = vpack.c.bf16 %v895_v50, %v894_v49  ;;  %v913_v2 = vpack.c.bf16 %v897_v54, %v896_v53 }
 0x1f7   : > { %v813_v60 = vpop.permute.xlu1 %812  ;;  %v808_v61 = vpop.permute.xlu0 %807 }
 0x1f8   : > { %v862_v62 = vmul.f32 %v813_v60, %v750_v55  ;;  %v861_v63 = vmul.f32 %v808_v61, %v749_v56  ;;  %1270 = vmatpush3.bf16.msra.mxu0 %v912_v59  ;;  %v899_v3 = vmax.f32 %v883_v57, 0.0  ;;  %v898_v4 = vmax.f32 %v882_v58, 0.0  ;;  %v911_v55 = vld [vmem:[%s1680_s17] sm:$0xf] }
 0x1f9   : > { %1271 = vmatprep.subr.bf16.mxu0 %v1529_v19  ;;  %v910_v56 = vld [vmem:[#allocation3] sm:$0xff] }
 0x1fa   : > { %v885_v5 = vadd.f32 %v1727_v33, %v862_v62  ;;  %v884_v6 = vadd.f32 %v1727_v33, %v861_v63  ;;  %v914_v17 = vpack.c.bf16 %v899_v3, %v898_v4 }
 0x1fb   : > { %v823_v7 = vpop.permute.xlu1 %822  ;;  %v818_v8 = vpop.permute.xlu0 %817 }
 0x1fc   : > { %v864_v9 = vmul.f32 %v823_v7, %v752_v0  ;;  %v863_v10 = vmul.f32 %v818_v8, %v751_v1  ;;  %1272 = vmatpush3.bf16.msra.mxu0 %v913_v2  ;;  %v901_v11 = vmax.f32 %v885_v5, 0.0  ;;  %v900_v12 = vmax.f32 %v884_v6, 0.0 }
 0x1fd   : > { %1273 = vmatprep.subr.bf16.mxu0 %v1529_v19 }
 0x1fe   : > { %v887_v15 = vadd.f32 %v1727_v33, %v864_v9  ;;  %v886_v16 = vadd.f32 %v1727_v33, %v863_v10  ;;  %v915_v25 = vpack.c.bf16 %v901_v11, %v900_v12 }
 0x1ff   : > { %v833_v18 = vpop.permute.xlu1 %832  ;;  %v828_v20 = vpop.permute.xlu0 %827 }
 0x200   : > { %v866_v21 = vmul.f32 %v833_v18, %v754_v13  ;;  %v865_v22 = vmul.f32 %v828_v20, %v753_v14  ;;  %1274 = vmatpush3.bf16.msra.mxu0 %v914_v17  ;;  %v903_v26 = vmax.f32 %v887_v15, 0.0  ;;  %v902_v27 = vmax.f32 %v886_v16, 0.0 }
 0x201   : > { %1275 = vmatprep.subr.bf16.mxu0 %v1529_v19 }
 0x202   : > { %v889_v28 = vadd.f32 %v1727_v33, %v866_v21  ;;  %v888_v29 = vadd.f32 %v1727_v33, %v865_v22  ;;  %v916_v41 = vpack.c.bf16 %v903_v26, %v902_v27 }
 0x203   : > { %v843_v30 = vpop.permute.xlu1 %842  ;;  %v838_v31 = vpop.permute.xlu0 %837 }
 0x204   : > { %v868_v32 = vmul.f32 %v843_v30, %v756_v23  ;;  %v867_v34 = vmul.f32 %v838_v31, %v755_v24  ;;  %1276 = vmatpush3.bf16.msra.mxu0 %v915_v25  ;;  %v905_v35 = vmax.f32 %v889_v28, 0.0  ;;  %v904_v36 = vmax.f32 %v888_v29, 0.0 }
 0x205   : > { %1277 = vmatprep.subr.bf16.mxu0 %v1529_v19 }
 0x206   : > { %v891_v39 = vadd.f32 %v1727_v33, %v868_v32  ;;  %v890_v40 = vadd.f32 %v1727_v33, %v867_v34  ;;  %v917_v46 = vpack.c.bf16 %v905_v35, %v904_v36 }
 0x207   : > { %v853_v42 = vpop.permute.xlu1 %852  ;;  %v848_v43 = vpop.permute.xlu0 %847 }
 0x208   : > { %v870_v44 = vmul.f32 %v853_v42, %v758_v37  ;;  %v869_v45 = vmul.f32 %v848_v43, %v757_v38  ;;  %1278 = vmatpush3.bf16.msra.mxu0 %v916_v41  ;;  %v907_v47 = vmax.f32 %v891_v39, 0.0  ;;  %v906_v48 = vmax.f32 %v890_v40, 0.0 }
 0x209   : > { %1279 = vmatprep.subr.bf16.mxu0 %v1529_v19 }
 0x20a   : > { %v893_v49 = vadd.f32 %v1727_v33, %v870_v44  ;;  %v892_v50 = vadd.f32 %v1727_v33, %v869_v45  ;;  %v918_v53 = vpack.c.bf16 %v907_v47, %v906_v48 }
 0x20c   : > { %1280 = vmatpush3.bf16.msra.mxu0 %v917_v46  ;;  %v909_v51 = vmax.f32 %v893_v49, 0.0  ;;  %v908_v52 = vmax.f32 %v892_v50, 0.0 }
 0x20d   : > { %1281 = vmatprep.subr.bf16.mxu0 %v1529_v19 }
 0x20e   : > { %v919_v54 = vpack.c.bf16 %v909_v51, %v908_v52 }
 0x210   : > { %1282 = vmatpush3.bf16.msra.mxu0 %v918_v53 }
 0x211   : > { %1283 = vmatprep.subr.bf16.mxu0 %v1529_v19 }
 0x214   : > { %1284 = vmatpush3.bf16.msra.mxu0 %v919_v54 }
 0x217   : > { %1286 = vmatmul.mubr.bf16.vlgmr.msra.gmra.mrb[0].mxu0 %v911_v55 }
 0x2ea   : > { %v954_v57 = vpop.f32.mrb[0].mxu0 }
 0x2eb   : > { %v960_v58 = vadd.f32 %v954_v57, %v910_v56  ;;  %v1287_v59 = vpop.f32.mrb[1].mxu0 }
 0x2ec   : > { %v957_v60 = vpop.f32.mrb[2].mxu0 }
 0x2ed   : > { %961 = vst [vmem:[#allocation3] sm:$0xff] %v960_v58  ;;  %v1288_v33 = vpop.f32.mrb[3].mxu0 }
 0x2ee PF: > { %p962_p2 = scmp.eq.s32.totalorder %s1510_s28, 1 }
 0x2f0   : > { %p963_p3 = pnand %p962_p2, %p739_p0 }
 0x2f1   : > { %v968_v19 = vld [vmem:[%s1842_s6] sm:$0xff] (!%p963_p3)  ;;  %v977_v62 = vld [vmem:[%s1844_s8 + $0x8] sm:$0xff] (!%p963_p3)  ;;  %v1531_v63 = vmov (!%p963_p3), 0   ;;  %v1532_v0 = vmov (!%p963_p3), 0.0|0.0   ;;  %v978_v2 = vld [vmem:[%s1844_s8 + $0x10] sm:$0xff] (!%p963_p3)  ;;  %vm1533_vm1 = vmmov (!%p963_p3), 0  }
 0x2f2   : > { %966 = sbr.rel (%p963_p3) target bundleno = 1100 (0x44c), region = 110  ;;  %v976_v61 = vld [vmem:[%s1844_s8] sm:$0xff] (!%p963_p3)  ;;  %1441 = vset.pattern.permute.xlu0 (!%p963_p3), %v1531_v63  ;;  %1324 = vmatprep.subr.bf16.mxu0 (!%p963_p3), %v1532_v0  ;;  %v979_v3 = vld [vmem:[%s1844_s8 + $0x18] sm:$0xff] (!%p963_p3)  ;;  %v1534_v5 = vmov (!%p963_p3), 0.0   ;;  %v981_v7 = vld [vmem:[%s1844_s8 + $0x28] sm:$0xff] (!%p963_p3)  ;;  %s1855_s15 = sld [smem:[#allocation11_spill]] (!%p963_p3) }
 0x2f3   : > { %v1325_v1 = vpack.c.bf16 (!%p963_p3), %v977_v62, %v976_v61  ;;  %971 = vperm.xlu0 (!%p963_p3), %1441, %v968_v19   ;;  %v1328_v4 = vpack.c.bf16 (!%p963_p3), %v979_v3, %v978_v2  ;;  %1321 = vmatprep.mubr.msk.f32.mxu0 (!%p963_p3), %vm1533_vm1, %v1534_v5  ;;  %v980_v6 = vld [vmem:[%s1844_s8 + $0x20] sm:$0xff] (!%p963_p3)  ;;  %v982_v9 = vld [vmem:[%s1844_s8 + $0x30] sm:$0xff] (!%p963_p3)  ;;  %v983_v10 = vld [vmem:[%s1844_s8 + $0x38] sm:$0xff] (!%p963_p3)  ;;  %s1856_s1 = sld [smem:[#allocation12_spill]] (!%p963_p3) }
 0x2f4   : > { %v1331_v8 = vpack.c.bf16 (!%p963_p3), %v981_v7, %v980_v6  ;;  %v1334_v11 = vpack.c.bf16 (!%p963_p3), %v983_v10, %v982_v9  ;;  %v984_v12 = vld [vmem:[%s1844_s8 + $0x40] sm:$0xff] (!%p963_p3)  ;;  %v985_v13 = vld [vmem:[%s1844_s8 + $0x48] sm:$0xff] (!%p963_p3)  ;;  %v986_v15 = vld [vmem:[%s1844_s8 + $0x50] sm:$0xff] (!%p963_p3) }
 0x2f5   : > { %1326 = vmatpush3.bf16.msra.mxu0 (!%p963_p3), %v1325_v1  ;;  %v1337_v14 = vpack.c.bf16 (!%p963_p3), %v985_v13, %v984_v12  ;;  %v987_v16 = vld [vmem:[%s1844_s8 + $0x58] sm:$0xff] (!%p963_p3)  ;;  %v988_v18 = vld [vmem:[%s1844_s8 + $0x60] sm:$0xff] (!%p963_p3)  ;;  %v989_v20 = vld [vmem:[%s1844_s8 + $0x68] sm:$0xff] (!%p963_p3) }
 0x2f6   : > { %1327 = vmatprep.subr.bf16.mxu0 (!%p963_p3), %v1532_v0  ;;  %v1340_v17 = vpack.c.bf16 (!%p963_p3), %v987_v16, %v986_v15  ;;  %v1343_v21 = vpack.c.bf16 (!%p963_p3), %v989_v20, %v988_v18  ;;  %v990_v22 = vld [vmem:[%s1844_s8 + $0x70] sm:$0xff] (!%p963_p3)  ;;  %v991_v23 = vld [vmem:[%s1844_s8 + $0x78] sm:$0xff] (!%p963_p3)  ;;  %v967_v25 = vld [vmem:[#allocation3] sm:$0xff] (!%p963_p3) }
 0x2f7   : > { %v1346_v24 = vpack.c.bf16 (!%p963_p3), %v991_v23, %v990_v22 }
 0x2f8   : > { %v1191_v28 = vld [vmem:[%s1855_s15] ss:$0 sm:$0xff] (!%p963_p3) }
 0x2f9   : > { %1329 = vmatpush3.bf16.msra.mxu0 %v1328_v4 }
 0x2fa   : > { %1330 = vmatprep.subr.bf16.mxu0 %v1532_v0 }
 0x2fd   : > { %1332 = vmatpush3.bf16.msra.mxu0 %v1331_v8 }
 0x2fe   : > { %1333 = vmatprep.subr.bf16.mxu0 %v1532_v0 }
 0x301   : > { %1335 = vmatpush3.bf16.msra.mxu0 %v1334_v11 }
 0x302   : > { %1336 = vmatprep.subr.bf16.mxu0 %v1532_v0 }
 0x305   : > { %1338 = vmatpush3.bf16.msra.mxu0 %v1337_v14 }
 0x306   : > { %1339 = vmatprep.subr.bf16.mxu0 %v1532_v0 }
 0x309   : > { %1341 = vmatpush3.bf16.msra.mxu0 %v1340_v17 }
 0x30a   : > { %1342 = vmatprep.subr.bf16.mxu0 %v1532_v0 }
 0x30d   : > { %1344 = vmatpush3.bf16.msra.mxu0 %v1343_v21 }
 0x30e   : > { %1345 = vmatprep.subr.bf16.mxu0 %v1532_v0 }
 0x311   : > { %1347 = vmatpush3.bf16.msra.mxu0 %v1346_v24 }
 0x372   : > { %v972_v26 = vpop.permute.xlu0 %971 }
 0x373   : > { %v974_v27 = vmul.f32 %v972_v26, %v967_v25 }
 0x375   : > { %975 = vst [vmem:[%s1847_s11] sm:$0xff] %v974_v27  ;;  %1322 = vmatmul.mubr.f32.vlgmr.msra.gmra.mrb[0].mxu0 %v974_v27 }
 0x448   : > { %v1065_v29 = vpop.f32.mrb[0].mxu0 }
 0x449   : > { %v1066_v30 = vadd.f32 %v1191_v28, %v1065_v29  ;;  %v1323_v31 = vpop.f32.mrb[1].mxu0 }
 0x44b   : > { %1069 = vst [vmem:[%s1856_s1] sm:$0xff] %v1066_v30 }
 0x44c PF: > { %s32_s12 = sadd.s32 1, %s1522_s12   ;;  %s1857_s27 = sld [smem:[#allocation9_spill]] }
 0x44d   : > { %p29_p4 = scmp.ge.s32.totalorder %s32_s12, 6   ;;  %s1858_s17 = sld [smem:[#allocation10_spill]] }
 0x44e   : > { %s1859_s1 = smov %s1502_s26  ;;  %s1860_s26 = smov %s1654_s25 }
 0x44f   : > { %s1861_s28 = smov %s1518_s30  ;;  %s1862_s29 = smov %s1867_s13 }
 0x450   :  { %31 = sbr.rel (!%p29_p4) target bundleno = 30 (0x1e), region = 158 }
 0x453   : > { %s1863_s30 = smov %s1858_s17 }

</bundles_post_ra>
